<compile_context>
chip_gen: v7x
topology: tpu7x:2x2x1
jax: 0.10.0
libtpu: 0.0.40
codegen_flags: <defaults>
</compile_context>

<pallas_src>
import functools

import jax
import jax.numpy as jnp
from jax.experimental import pallas as pl
from jax.experimental.pallas import tpu as pltpu

_LANES = 128            # vreg lane width
_MAX_BLOCK_ROWS = 512   # 512 x 128 f32 = 256 KiB per buffer per tile


def _round_up(x: int, m: int) -> int:
    return (x + m - 1) // m * m


def _scaled_add_kernel(x_ref, z_ref, o_ref, *, noise_sigma):
    # Keep all math in f32 (v5e VPU/EUP have no native bf16); cast once at the store.
    x = x_ref[...].astype(jnp.float32)
    z = z_ref[...]  # standard normal, f32
    o_ref[...] = (x + noise_sigma * z).astype(o_ref.dtype)


def add_noise(x, *, noise_sigma, key):
    """out = x + noise_sigma * N(0, 1), fused in a single lane-dense Pallas pass."""
    orig_shape = x.shape
    total = x.size

    # Lane-dense layout: flatten and pad so the trailing dim is exactly 128 lanes
    # and the row count is a multiple of the tile height (itself a multiple of 8).
    rows = pl.cdiv(total, _LANES)
    block_rows = min(_MAX_BLOCK_ROWS, _round_up(rows, 8))
    padded_rows = _round_up(rows, block_rows)
    padded_total = padded_rows * _LANES

    x2d = jnp.pad(x.reshape(-1), (0, padded_total - total)).reshape(padded_rows, _LANES)

    # Standard-normal noise in f32, generated once for the whole slab.
    # TODO(synk): generate the noise in-kernel with pltpu.prng_seed/prng_random_bits
    # (halves HBM reads) once the target runtime lowers the TPU PRNG primitives; they
    # fail to lower under the CPU/interpret harness, so noise comes from jax.random here.
    z2d = jax.random.normal(key, (padded_rows, _LANES), dtype=jnp.float32)

    grid = (padded_rows // block_rows,)
    kernel = functools.partial(_scaled_add_kernel, noise_sigma=float(noise_sigma))

    noisy2d = pl.pallas_call(
        kernel,
        out_shape=jax.ShapeDtypeStruct((padded_rows, _LANES), x.dtype),
        grid=grid,
        in_specs=[
            pl.BlockSpec((block_rows, _LANES), lambda i: (i, 0)),
            pl.BlockSpec((block_rows, _LANES), lambda i: (i, 0)),
        ],
        out_specs=pl.BlockSpec((block_rows, _LANES), lambda i: (i, 0)),
        compiler_params=pltpu.CompilerParams(
            dimension_semantics=("parallel",),
        ),
    )(x2d, z2d)

    return noisy2d.reshape(-1)[:total].reshape(orig_shape)


def add_noise_forward(data, *, field, noise_sigma, key):
    """Dict-in / dict-out forward matching AddNoiseModule.forward semantics."""
    out = dict(data)                    # untouched keys propagate unchanged
    x = data[field]
    out[field + "_noiseless"] = x       # alias: JAX arrays are immutable, no copy needed
    out[field] = add_noise(x, noise_sigma=noise_sigma, key=key)
    return out


if __name__ == "__main__":
    key = jax.random.PRNGKey(0)
    # Small synthetic "atomic data dict": 16 nodes, field irreps dim = 8.
    n_nodes, dim = 16, 8
    field = "pos"
    noise_sigma = 0.1

    k_data, k_other, k_noise = jax.random.split(key, 3)
    data = {
        field: jax.random.normal(k_data, (n_nodes, dim), dtype=jnp.float32),
        "other_feature": jax.random.normal(k_other, (n_nodes, 4), dtype=jnp.float32),
    }

    out = add_noise_forward(data, field=field, noise_sigma=noise_sigma, key=k_noise)
    jax.block_until_ready(out[field])
    jax.block_until_ready(out[field + "_noiseless"])

    # Sanity checks on the module's contract.
    assert out[field].shape == (n_nodes, dim)
    assert out[field].dtype == data[field].dtype
    assert jnp.array_equal(out[field + "_noiseless"], data[field])
    assert jnp.array_equal(out["other_feature"], data["other_feature"])
    # Noise actually applied (sigma > 0) and bounded in magnitude.
    delta = out[field] - data[field]
    assert float(jnp.max(jnp.abs(delta))) > 0.0
    assert float(jnp.max(jnp.abs(delta))) < noise_sigma * 10.0

    print("KERNEL_OK")
</pallas_src>

<mosaic_0001>
module attributes {stable_mosaic.version = 11 : i64} {
  func.func @_scaled_add_kernel(%arg0: i32, %arg1: memref<8x128xf32, #tpu.memory_space<vmem>>, %arg2: memref<8x128xf32, #tpu.memory_space<vmem>>, %arg3: memref<8x128xf32, #tpu.memory_space<vmem>>) attributes {dimension_semantics = [#tpu.dimension_semantics<parallel>], iteration_bounds = array<i64: 1>, scalar_prefetch = 0 : i64, scratch_operands = 0 : i64, tpu.core_type = #tpu.core_type<tc>, window_params = [{transform_indices = @transform_0, window_bounds = array<i64: 8, 128>}, {transform_indices = @transform_1, window_bounds = array<i64: 8, 128>}, {transform_indices = @transform_2, window_bounds = array<i64: 8, 128>}]} {
    %c0 = arith.constant 0 : index
    %c0_0 = arith.constant 0 : index
    %0 = vector.load %arg1[%c0, %c0_0] : memref<8x128xf32, #tpu.memory_space<vmem>>, vector<8x128xf32>
    %c0_1 = arith.constant 0 : index
    %c0_2 = arith.constant 0 : index
    %1 = vector.load %arg2[%c0_1, %c0_2] : memref<8x128xf32, #tpu.memory_space<vmem>>, vector<8x128xf32>
    %cst = arith.constant 1.000000e-01 : f32
    %2 = vector.broadcast %cst : f32 to vector<8x128xf32>
    %3 = arith.mulf %2, %1 : vector<8x128xf32>
    %4 = arith.addf %0, %3 : vector<8x128xf32>
    %c0_3 = arith.constant 0 : index
    %c0_4 = arith.constant 0 : index
    %5 = vector.load %arg3[%c0_3, %c0_4] : memref<8x128xf32, #tpu.memory_space<vmem>>, vector<8x128xf32>
    tpu.vector_store %arg3[%c0_3, %c0_4], %4 {strides = array<i32>} : memref<8x128xf32, #tpu.memory_space<vmem>>, vector<8x128xf32>,
    return
  }
  func.func @transform_0(%arg0: i32) -> (i32, i32) {
    %c0_i32 = arith.constant 0 : i32
    %c0_i32_0 = arith.constant 0 : i32
    return %arg0, %c0_i32 : i32, i32
  }
  func.func @transform_1(%arg0: i32) -> (i32, i32) {
    %c0_i32 = arith.constant 0 : i32
    %c0_i32_0 = arith.constant 0 : i32
    return %arg0, %c0_i32 : i32, i32
  }
  func.func @transform_2(%arg0: i32) -> (i32, i32) {
    %c0_i32 = arith.constant 0 : i32
    %c0_i32_0 = arith.constant 0 : i32
    return %arg0, %c0_i32 : i32, i32
  }
}

</mosaic_0001>

<bundles_post_ra>
// kernel: tpu_custom_call.1
= control target key start
LH: loop header
LB: loop body
LE: loop exit
PB: predicated region body
PF: predicated region fallthrough
CT: control target
= control target key end

     0   :  { %7 = vsyncpa [#allocation3], 0  ;;  %s186_s0 = inlined_call_operand.hbm [shape: f32[8,128], index: 0, kind: input, shape index: {}]   ;;  %s187_s1 = inlined_call_operand.hbm [shape: f32[8,128], index: 1, kind: input, shape index: {}]   ;;  %s188_s2 = inlined_call_operand.hbm [shape: f32[8,128], index: 2, kind: output, shape index: {}]  }
   0x1   :  { %8 = vsyncpa [#allocation6], 0 }
   0x2   :  { %9 = vsyncpa [#allocation4], 0  ;;  %s132_s9 = smov [#allocation2]   ;;  %s133_s11 = smov [#allocation5]  }
   0x3   :  { %s16_s10 = sshll.u32 %s132_s9, 4  ;;  %s26_s12 = sshll.u32 %s133_s11, 4  ;;  %s17_s10 = int_to_ptr.vmem [resolvable:$true] %s16_s10  ;;  %s27_s12 = int_to_ptr.vmem [resolvable:$true] %s26_s12 }
   0x4   :  { %s60_s15 = scalar_lea.hbm %s186_s0, 128 }
   0x5   :  { %p61_p0 = scmp.ne.s32.totalorder %s186_s0, %s60_s15  ;;  %p64_p1 = scmp.lt.u32.totalorder %s60_s15, %s186_s0 }
   0x7   :  { %p66_p2 = pnand %p64_p1, %p61_p0 }
   0x9   :  { %69 = shalt.err (!%p66_p2)
}
   0xa   :  { %s70_s20 = scalar_lea.vmem %s17_s10, 128  ;;  %p75_p4 = scmp.lt.s32.totalorder %s17_s10, %s17_s10 }
   0xb   :  { %p71_p3 = scmp.ne.s32.totalorder %s17_s10, %s70_s20  ;;  %p76_p5 = scmp.lt.s32.totalorder %s70_s20, %s70_s20 }
   0xd   :  { %p77_p6 = por %p76_p5, %p75_p4 }
   0xf   :  { %p78_p7 = pnand %p77_p6, %p71_p3 }
  0x11   :  { %81 = shalt.err (!%p78_p7)
}
  0x12   :  { %19 = dma.hbm_to_vmem [thread:$0]  %s186_s0, 128, %s17_s10, [#allocation3]  }
  0x13   :  { %s82_s25 = scalar_lea.hbm %s187_s1, 128 }
  0x14   :  { %p83_p8 = scmp.ne.s32.totalorder %s187_s1, %s82_s25  ;;  %p86_p9 = scmp.lt.u32.totalorder %s82_s25, %s187_s1 }
  0x16   :  { %p88_p10 = pnand %p86_p9, %p83_p8 }
  0x18   :  { %91 = shalt.err (!%p88_p10)
}
  0x19   :  { %s92_s30 = scalar_lea.vmem %s27_s12, 128  ;;  %p97_p12 = scmp.lt.s32.totalorder %s27_s12, %s27_s12 }
  0x1a   :  { %p93_p11 = scmp.ne.s32.totalorder %s27_s12, %s92_s30  ;;  %p98_p13 = scmp.lt.s32.totalorder %s92_s30, %s92_s30 }
  0x1c   :  { %p99_p0 = por %p98_p13, %p97_p12 }
  0x1e   :  { %p100_p1 = pnand %p99_p0, %p93_p11 }
  0x20   :  { %103 = shalt.err (!%p100_p1)
}
  0x21   :  { %29 = dma.hbm_to_vmem [thread:$0]  %s187_s1, 128, %s27_s12, [#allocation6]  }
  0x22   :  { %126 = dma.done.wait [#allocation3], 128  }
  0x23   :  { %127 = vsyncadd [#allocation3], 4294967168 }
  0x24   :  { %128 = dma.done.wait [#allocation6], 128  }
  0x25   :  { %129 = vsyncadd [#allocation6], 4294967168  ;;  %v36_v0 = vld [vmem:[#allocation2] sm:$0xff]  ;;  %v37_v1 = vld [vmem:[#allocation5] sm:$0xff]  ;;  %s134_s4 = smov [#allocation7]  }
  0x26   :  { %s47_s5 = sshll.u32 %s134_s4, 4  ;;  %v38_v2 = vmul.f32 0.1, %v37_v1  ;;  %s48_s5 = int_to_ptr.vmem [resolvable:$true] %s47_s5 }
  0x27   :  { %s104_s6 = scalar_lea.vmem %s48_s5, 128  ;;  %p109_p3 = scmp.lt.s32.totalorder %s48_s5, %s48_s5 }
  0x28   :  { %v39_v3 = vadd.f32 %v38_v2, %v36_v0  ;;  %p105_p2 = scmp.ne.s32.totalorder %s48_s5, %s104_s6  ;;  %p110_p4 = scmp.lt.s32.totalorder %s104_s6, %s104_s6 }
  0x2a   :  { %40 = vst [vmem:[#allocation7] sm:$0xff] %v39_v3  ;;  %p111_p5 = por %p110_p4, %p109_p3 }
  0x2c   :  { %p112_p6 = pnand %p111_p5, %p105_p2 }
  0x2e   :  { %115 = shalt.err (!%p112_p6)
}
  0x2f   :  { %s116_s8 = scalar_lea.hbm %s188_s2, 128 }
  0x30   :  { %p117_p7 = scmp.ne.s32.totalorder %s188_s2, %s116_s8  ;;  %p120_p8 = scmp.lt.u32.totalorder %s116_s8, %s188_s2 }
  0x32   :  { %p122_p9 = pnand %p120_p8, %p117_p7 }
  0x34   :  { %125 = shalt.err (!%p122_p9)
}
  0x35   :  { %50 = dma.vmem_to_hbm [thread:$0]  %s48_s5, 128, %s188_s2, [#allocation4]  }
  0x36   :  { %130 = dma.done.wait [#allocation4], 128  }
  0x37   :  { %131 = vsyncadd [#allocation4], 4294967168 }
  0x38   :  { %54 = vsyncpa [#allocation3], 1 }
  0x39   :  { %55 = vsyncpa [#allocation6], 1 }
  0x3a   :  { %56 = vsyncpa [#allocation4], 1 }

</bundles_post_ra>
